<compile_context>
chip_gen: v6e
topology: v6e:2x2x1
jax: 0.10.0
libtpu: 0.0.40
codegen_flags: <defaults>
</compile_context>

<pallas_src>
import functools

import jax
import jax.numpy as jnp
from jax.experimental import pallas as pl
from jax.experimental.pallas import tpu as pltpu

_HIGHEST = jax.lax.Precision.HIGHEST


# ------------------------------ Pallas kernel --------------------------------

def _recurrent_kernel(p_ref,        # VMEM (t_chunk, bb, H) f32  precomputed input proj (+bias)
                      h0_ref,       # VMEM (bb, H)               initial hidden state
                      w_h2h_ref,    # VMEM (H, H)                W_h2h^T (bf16 or f32)
                      w_xor_ref,    # VMEM (H//2, H)             W_xor^T (bf16 or f32)
                      b_xor_ref,    # VMEM (1, H) f32
                      scale_ref,    # SMEM (1,1) f32  (or VMEM (1,1) in fallback)
                      out_ref,      # VMEM (t_chunk, bb, H)      per-step hidden states
                      h_scratch,    # VMEM (bb, H) f32           recurrent carry
                      *, scale_in_smem):
    t_blk = pl.program_id(1)

    @pl.when(t_blk == 0)
    def _():
        h_scratch[...] = h0_ref[...].astype(jnp.float32)

    if scale_in_smem:
        scale1p = scale_ref[0, 0]          # scalar read from SMEM
    else:
        scale1p = scale_ref[...]           # (1,1) VMEM block, broadcasts

    w_h2h = w_h2h_ref[...]
    w_xor = w_xor_ref[...]
    b_xor = b_xor_ref[...]
    cd = w_h2h.dtype                       # MXU operand dtype (bf16 in prod)
    t_chunk = p_ref.shape[0]
    half = out_ref.shape[-1] // 2

    def step(i, h_prev):
        # h_prev: (bb, H) f32 carry.  Only the h2h dot is on the serial path.
        h_cand = p_ref[i] + jnp.dot(h_prev.astype(cd), w_h2h,
                                    preferred_element_type=jnp.float32)
        # SelfScalableTanh: tanh(x) + scale*tanh(x) == (1 + scale)*tanh(x)   (f32 math)
        h_act = scale1p * jnp.tanh(h_cand)
        # DifferentiableXORLayer (residual form, as in the PyTorch module)
        a = jax.nn.sigmoid(h_act[:, :half])
        b = jax.nn.sigmoid(h_act[:, half:])
        xor_out = 0.5 * (a + b - 2.0 * a * b)
        h_new = h_act + (jnp.dot(xor_out.astype(cd), w_xor,
                                 preferred_element_type=jnp.float32) + b_xor)
        out_ref[i] = h_new.astype(out_ref.dtype)
        return h_new

    h_final = jax.lax.fori_loop(0, t_chunk, step, h_scratch[...], unroll=True)
    h_scratch[...] = h_final


# ------------------------------ wrappers --------------------------------------

def prepare_params(raw_params, token_embed_dim, compute_dtype=jnp.bfloat16):
    """One-time conversion of PyTorch-layout params to kernel layout.

    Weights that feed the MXU are stored in `compute_dtype` (bf16 by default:
    2-4x MXU throughput, half the resident VMEM / HBM bytes); biases and the
    (1+scale) scalar stay f32.
    """
    w_in_t = raw_params["w_in"].T                               # (E_tok + E_tr, H)
    H = raw_params["w_h2h"].shape[0]
    return {
        "w_tok": w_in_t[:token_embed_dim].astype(compute_dtype),            # (E_tok, H)
        "w_tr": w_in_t[token_embed_dim:].astype(compute_dtype),             # (E_tr, H)
        "w_h2h": raw_params["w_h2h"].T.astype(compute_dtype),               # (H, H)
        "bias": (raw_params["b_in"] + raw_params["b_h2h"]).reshape(1, H).astype(jnp.float32),
        "w_xor": raw_params["w_xor"].T.astype(compute_dtype),               # (H//2, H)
        "b_xor": raw_params["b_xor"].reshape(1, H).astype(jnp.float32),
        "scale1p": (1.0 + raw_params["scale"]).reshape(1, 1).astype(jnp.float32),
    }


def precompute_input_projection(token_emb_seq, transformer_out_seq, kp):
    """P[t] = tok[t] @ W_tok + tr[t] @ W_tr + (b_in + b_h2h), for all timesteps.

    Runs as one (T*B, E) x (E, H) matmul at full MXU occupancy (M = T*B rather
    than B), removing two of three dots + the bias broadcast from every
    sequential recurrent step.
    """
    T, B, _ = token_emb_seq.shape
    cd = kp["w_tok"].dtype
    tok = token_emb_seq.reshape(T * B, -1).astype(cd)
    tr = transformer_out_seq.reshape(T * B, -1).astype(cd)
    p = (jnp.dot(tok, kp["w_tok"], preferred_element_type=jnp.float32, precision=_HIGHEST)
         + jnp.dot(tr, kp["w_tr"], preferred_element_type=jnp.float32, precision=_HIGHEST)
         + kp["bias"])
    return p.reshape(T, B, -1)                                   # (T, B, H) f32


def _largest_divisor_leq(n, cap):
    for c in range(min(n, cap), 0, -1):
        if n % c == 0:
            return c
    return 1


def _build_recurrent_call(T, B, H, t_chunk, b_block, weight_dtype, out_dtype,
                          *, single_buffer_weights, scale_in_smem):
    grid = (B // b_block, T // t_chunk)
    itemsize = lambda dt: jnp.dtype(dt).itemsize

    def const_spec(shape):
        # Weights/biases: same block every grid step -> DMA'd once, resident in VMEM.
        kwargs = {}
        if single_buffer_weights:
            kwargs["pipeline_mode"] = pl.Buffered(1)   # never change: 1 buffer, not 2
        return pl.BlockSpec(shape, lambda b, t: (0,) * len(shape), **kwargs)

    if scale_in_smem:
        scale_spec = pl.BlockSpec(memory_space=pltpu.MemorySpace.SMEM)
    else:
        scale_spec = pl.BlockSpec((1, 1), lambda b, t: (0, 0))

    in_specs = [
        pl.BlockSpec((t_chunk, b_block, H), lambda b, t: (t, b, 0)),   # P (streamed)
        pl.BlockSpec((b_block, H), lambda b, t: (b, 0)),               # h0
        const_spec((H, H)),                                            # W_h2h^T
        const_spec((H // 2, H)),                                       # W_xor^T
        const_spec((1, H)),                                            # b_xor
        scale_spec,                                                    # (1 + scale)
    ]
    out_specs = pl.BlockSpec((t_chunk, b_block, H), lambda b, t: (t, b, 0))

    weight_bytes = (H * H + (H // 2) * H) * itemsize(weight_dtype) + H * 4 + 4
    p_bytes = T * B * H * 4
    out_bytes = T * B * H * itemsize(out_dtype)
    cost = pl.CostEstimate(
        flops=2 * T * B * (H * H + (H // 2) * H),
        transcendentals=2 * T * B * H,     # tanh(H) + two half-width sigmoids per row/step
        bytes_accessed=weight_bytes + p_bytes + out_bytes + B * H * itemsize(out_dtype),
    )

    # Explicit VMEM budget: resident weights (x buffers) + double-buffered stream
    # chunks + carry scratch, with headroom; capped at v7x's 64 MiB physical.
    weight_buf = 1 if single_buffer_weights else 2
    vmem_needed = (weight_bytes * weight_buf
                   + 2 * t_chunk * b_block * H * (4 + itemsize(out_dtype))
                   + 2 * b_block * H * itemsize(out_dtype)
                   + b_block * H * 4)
    vmem_limit = int(min(64 * 1024 * 1024, max(16 * 1024 * 1024, 2 * vmem_needed)))

    kernel = functools.partial(_recurrent_kernel, scale_in_smem=scale_in_smem)

    return pl.pallas_call(
        kernel,
        out_shape=jax.ShapeDtypeStruct((T, B, H), out_dtype),
        grid=grid,
        in_specs=in_specs,
        out_specs=out_specs,
        scratch_shapes=[pltpu.VMEM((b_block, H), jnp.float32)],
        compiler_params=pltpu.CompilerParams(
            dimension_semantics=("parallel", "arbitrary"),   # batch parallel, time sequential
            vmem_limit_bytes=vmem_limit,
        ),
        cost_estimate=cost,
    )


def transformer_rnn_sequence(token_emb_seq, transformer_out_seq, h0, kp,
                             *, t_chunk=None, b_block=None):
    """Run T recurrent steps: XLA precomputes the input projection, one
    pallas_call runs the recurrence with weights resident in VMEM.

    token_emb_seq:       [T, B, token_embed_dim]
    transformer_out_seq: [T, B, transformer_dim]
    h0:                  [B, hidden_size]
    Returns all hidden states, shape [T, B, hidden_size].
    """
    T, B, _ = token_emb_seq.shape
    H = h0.shape[-1]
    assert H % 2 == 0, "hidden_size must be even for the XOR module"

    if t_chunk is None:
        t_chunk = _largest_divisor_leq(T, 8)
    assert T % t_chunk == 0
    if b_block is None:
        b_block = B
    assert B % b_block == 0
    assert b_block == B or b_block % 8 == 0, "per-core batch block must be sublane aligned"

    p_seq = precompute_input_projection(token_emb_seq, transformer_out_seq, kp)  # (T,B,H) f32
    args = (p_seq, h0, kp["w_h2h"], kp["w_xor"], kp["b_xor"], kp["scale1p"])

    try:
        call = _build_recurrent_call(T, B, H, t_chunk, b_block,
                                     kp["w_h2h"].dtype, h0.dtype,
                                     single_buffer_weights=True, scale_in_smem=True)
        return call(*args)
    except Exception:
        # Fallback for Pallas builds without pipeline_mode / un-blocked SMEM input
        # specs: identical semantics, default double-buffering, VMEM (1,1) scale.
        call = _build_recurrent_call(T, B, H, t_chunk, b_block,
                                     kp["w_h2h"].dtype, h0.dtype,
                                     single_buffer_weights=False, scale_in_smem=False)
        return call(*args)


def transformer_rnn_cell(token_emb, transformer_out, h_prev, kp):
    """Single-step forward == the original PyTorch module's forward."""
    out = transformer_rnn_sequence(token_emb[None], transformer_out[None], h_prev, kp,
                                   t_chunk=1)
    return out[0]


# ----------------------------- pure-JAX reference -----------------------------

def reference_step(token_emb, transformer_out, h_prev, params):
    """Reference identical to the PyTorch module semantics (raw param layout)."""
    combined = jnp.concatenate([token_emb, transformer_out], axis=-1)
    h_cand = (jnp.dot(combined, params["w_in"].T, precision=_HIGHEST) + params["b_in"]
              + jnp.dot(h_prev, params["w_h2h"].T, precision=_HIGHEST) + params["b_h2h"])
    t = jnp.tanh(h_cand)
    h_act = t + params["scale"] * t
    d = h_act.shape[-1] // 2
    a = jax.nn.sigmoid(h_act[:, :d])
    b = jax.nn.sigmoid(h_act[:, d:])
    xor_out = 0.5 * (a + b - 2.0 * a * b)
    return h_act + (jnp.dot(xor_out, params["w_xor"].T, precision=_HIGHEST) + params["b_xor"])


def reference_sequence(token_emb_seq, transformer_out_seq, h0, params):
    h = h0
    outs = []
    for t in range(token_emb_seq.shape[0]):
        h = reference_step(token_emb_seq[t], transformer_out_seq[t], h, params)
        outs.append(h)
    return jnp.stack(outs, axis=0)


def init_params(key, token_embed_dim, transformer_dim, hidden_size):
    """Deterministic PyTorch-nn.Linear-style (uniform +-1/sqrt(fan_in)) init."""
    ks = jax.random.split(key, 6)
    in_dim = token_embed_dim + transformer_dim

    def lin(kw, kb, fan_in, fan_out):
        bound = 1.0 / jnp.sqrt(fan_in)
        w = jax.random.uniform(kw, (fan_out, fan_in), jnp.float32, -bound, bound)
        b = jax.random.uniform(kb, (fan_out,), jnp.float32, -bound, bound)
        return w, b

    w_in, b_in = lin(ks[0], ks[1], in_dim, hidden_size)
    w_h2h, b_h2h = lin(ks[2], ks[3], hidden_size, hidden_size)
    w_xor, b_xor = lin(ks[4], ks[5], hidden_size // 2, hidden_size)
    return {
        "w_in": w_in, "b_in": b_in,
        "w_h2h": w_h2h, "b_h2h": b_h2h,
        "w_xor": w_xor, "b_xor": b_xor,
        "scale": jnp.float32(0.1),   # SelfScalableTanh init_scale
    }


if __name__ == "__main__":
    B = 2
    token_embed_dim = 16
    transformer_dim = 16
    hidden_size = 32
    T = 8

    key = jax.random.PRNGKey(0)
    k_tok, k_trans, k_h, k_params = jax.random.split(key, 4)

    token_emb_seq = jax.random.normal(k_tok, (T, B, token_embed_dim), jnp.float32)
    transformer_out_seq = jax.random.normal(k_trans, (T, B, transformer_dim), jnp.float32)
    h0 = jax.random.normal(k_h, (B, hidden_size), jnp.float32)

    raw_params = init_params(k_params, token_embed_dim, transformer_dim, hidden_size)
    ref_seq = reference_sequence(token_emb_seq, transformer_out_seq, h0, raw_params)

    # (a) f32 compute path: tight check against the PyTorch-semantics reference.
    kp32 = prepare_params(raw_params, token_embed_dim, compute_dtype=jnp.float32)
    out32 = jax.block_until_ready(
        transformer_rnn_sequence(token_emb_seq, transformer_out_seq, h0, kp32, t_chunk=2))
    assert out32.shape == (T, B, hidden_size)
    assert jnp.allclose(out32, ref_seq, rtol=1e-4, atol=1e-4), "f32 sequence mismatch vs reference"

    # (b) bf16 MXU-operand path (production config): looser tolerance vs f32 reference.
    kp16 = prepare_params(raw_params, token_embed_dim, compute_dtype=jnp.bfloat16)
    out16 = jax.block_until_ready(
        transformer_rnn_sequence(token_emb_seq, transformer_out_seq, h0, kp16, t_chunk=4))
    assert jnp.allclose(out16, ref_seq, rtol=5e-2, atol=5e-2), "bf16 sequence mismatch vs reference"

    # (c) single-step cell == original PyTorch module forward.
    out_cell = jax.block_until_ready(
        transformer_rnn_cell(token_emb_seq[0], transformer_out_seq[0], h0, kp32))
    ref_cell = reference_step(token_emb_seq[0], transformer_out_seq[0], h0, raw_params)
    assert out_cell.shape == (B, hidden_size)
    assert jnp.allclose(out_cell, ref_cell, rtol=1e-4, atol=1e-4), "cell mismatch vs reference"

    print("KERNEL_OK")
</pallas_src>

<mosaic_0001>
module attributes {stable_mosaic.version = 11 : i64} {
  func.func @_recurrent_kernel(%arg0: i32, %arg1: i32, %arg2: memref<2x2x32xf32, #tpu.memory_space<vmem>>, %arg3: memref<2x32xf32, #tpu.memory_space<vmem>>, %arg4: memref<32x32xf32, #tpu.memory_space<vmem>>, %arg5: memref<16x32xf32, #tpu.memory_space<vmem>>, %arg6: memref<1x32xf32, #tpu.memory_space<vmem>>, %arg7: memref<1x1xf32, #tpu.memory_space<smem>>, %arg8: memref<2x2x32xf32, #tpu.memory_space<vmem>>, %arg9: memref<2x32xf32, #tpu.memory_space<vmem>>) attributes {dimension_semantics = [#tpu.dimension_semantics<parallel>, #tpu.dimension_semantics<arbitrary>], iteration_bounds = array<i64: 1, 4>, scalar_prefetch = 0 : i64, scratch_operands = 1 : i64, tpu.core_type = #tpu.core_type<tc>, window_params = [{transform_indices = @transform_0, window_bounds = array<i64: 2, 2, 32>}, {transform_indices = @transform_1, window_bounds = array<i64: 2, 32>}, {pipeline_mode = #tpu.pipeline_mode<synchronous>, transform_indices = @transform_2, window_bounds = array<i64: 32, 32>}, {pipeline_mode = #tpu.pipeline_mode<synchronous>, transform_indices = @transform_3, window_bounds = array<i64: 16, 32>}, {pipeline_mode = #tpu.pipeline_mode<synchronous>, transform_indices = @transform_4, window_bounds = array<i64: 1, 32>}, {transform_indices = @transform_5, window_bounds = array<i64: 1, 1>}, {transform_indices = @transform_6, window_bounds = array<i64: 2, 2, 32>}]} {
    %c0_i32 = arith.constant 0 : i32
    %0 = arith.cmpi eq, %arg1, %c0_i32 : i32
    %1 = arith.extui %0 : i1 to i32
    %c0_i32_0 = arith.constant 0 : i32
    %2 = arith.cmpi ne, %1, %c0_i32_0 : i32
    scf.if %2 {
      %c0_32 = arith.constant 0 : index
      %c0_33 = arith.constant 0 : index
      %79 = vector.load %arg3[%c0_32, %c0_33] : memref<2x32xf32, #tpu.memory_space<vmem>>, vector<2x32xf32>
      %c0_34 = arith.constant 0 : index
      %c0_35 = arith.constant 0 : index
      %80 = vector.load %arg9[%c0_34, %c0_35] : memref<2x32xf32, #tpu.memory_space<vmem>>, vector<2x32xf32>
      tpu.vector_store %arg9[%c0_34, %c0_35], %79 {strides = array<i32>} : memref<2x32xf32, #tpu.memory_space<vmem>>, vector<2x32xf32>,
    } else {
    }
    %c0 = arith.constant 0 : index
    %c0_1 = arith.constant 0 : index
    %3 = memref.load %arg7[%c0, %c0_1] : memref<1x1xf32, #tpu.memory_space<smem>>
    %c0_2 = arith.constant 0 : index
    %c0_3 = arith.constant 0 : index
    %4 = vector.load %arg4[%c0_2, %c0_3] : memref<32x32xf32, #tpu.memory_space<vmem>>, vector<32x32xf32>
    %c0_4 = arith.constant 0 : index
    %c0_5 = arith.constant 0 : index
    %5 = vector.load %arg5[%c0_4, %c0_5] : memref<16x32xf32, #tpu.memory_space<vmem>>, vector<16x32xf32>
    %c0_6 = arith.constant 0 : index
    %c0_7 = arith.constant 0 : index
    %6 = vector.load %arg6[%c0_6, %c0_7] : memref<1x32xf32, #tpu.memory_space<vmem>>, vector<1x32xf32>
    %c0_8 = arith.constant 0 : index
    %c0_9 = arith.constant 0 : index
    %7 = vector.load %arg9[%c0_8, %c0_9] : memref<2x32xf32, #tpu.memory_space<vmem>>, vector<2x32xf32>
    %c0_i32_10 = arith.constant 0 : i32
    %8 = arith.index_cast %c0_i32_10 : i32 to index
    %c0_11 = arith.constant 0 : index
    %c0_12 = arith.constant 0 : index
    %9 = vector.load %arg2[%8, %c0_11, %c0_12] : memref<2x2x32xf32, #tpu.memory_space<vmem>>, vector<1x2x32xf32>
    %10 = vector.shape_cast %9 : vector<1x2x32xf32> to vector<2x32xf32>
    %cst = arith.constant dense<0.000000e+00> : vector<2x32xf32>
    %11 = tpu.matmul %7, %4, %cst {dimension_numbers = #tpu.dot_dimension_numbers<[1], [0], [0], [1], [0, 0, 1, 1], [], []>} : vector<2x32xf32>, vector<32x32xf32>, vector<2x32xf32> -> vector<2x32xf32>
    %12 = arith.addf %10, %11 : vector<2x32xf32>
    %13 = math.tanh %12 : vector<2x32xf32>
    %14 = vector.broadcast %3 : f32 to vector<2x32xf32>
    %15 = arith.mulf %14, %13 : vector<2x32xf32>
    %16 = vector.extract_strided_slice %15 {offsets = [0, 0], sizes = [2, 16], strides = [1, 1]} : vector<2x32xf32> to vector<2x16xf32>
    %17 = arith.negf %16 : vector<2x16xf32>
    %18 = math.exp %17 : vector<2x16xf32>
    %cst_13 = arith.constant 1.000000e+00 : f32
    %19 = vector.broadcast %cst_13 : f32 to vector<2x16xf32>
    %20 = arith.addf %19, %18 : vector<2x16xf32>
    %21 = arith.divf %19, %20 : vector<2x16xf32>
    %22 = vector.extract_strided_slice %15 {offsets = [0, 16], sizes = [2, 16], strides = [1, 1]} : vector<2x32xf32> to vector<2x16xf32>
    %23 = arith.negf %22 : vector<2x16xf32>
    %24 = math.exp %23 : vector<2x16xf32>
    %cst_14 = arith.constant 1.000000e+00 : f32
    %25 = vector.broadcast %cst_14 : f32 to vector<2x16xf32>
    %26 = arith.addf %25, %24 : vector<2x16xf32>
    %27 = arith.divf %25, %26 : vector<2x16xf32>
    %28 = arith.addf %21, %27 : vector<2x16xf32>
    %cst_15 = arith.constant 2.000000e+00 : f32
    %29 = vector.broadcast %cst_15 : f32 to vector<2x16xf32>
    %30 = arith.mulf %29, %21 : vector<2x16xf32>
    %31 = arith.mulf %30, %27 : vector<2x16xf32>
    %32 = arith.subf %28, %31 : vector<2x16xf32>
    %cst_16 = arith.constant 5.000000e-01 : f32
    %33 = vector.broadcast %cst_16 : f32 to vector<2x16xf32>
    %34 = arith.mulf %33, %32 : vector<2x16xf32>
    %cst_17 = arith.constant dense<0.000000e+00> : vector<2x32xf32>
    %35 = tpu.matmul %34, %5, %cst_17 {dimension_numbers = #tpu.dot_dimension_numbers<[1], [0], [0], [1], [0, 0, 1, 1], [], []>} : vector<2x16xf32>, vector<16x32xf32>, vector<2x32xf32> -> vector<2x32xf32>
    %36 = vector.broadcast %6 : vector<1x32xf32> to vector<2x32xf32>
    %37 = arith.addf %35, %36 : vector<2x32xf32>
    %38 = arith.addf %15, %37 : vector<2x32xf32>
    %39 = arith.index_cast %c0_i32_10 : i32 to index
    %c0_18 = arith.constant 0 : index
    %c0_19 = arith.constant 0 : index
    %40 = vector.load %arg8[%39, %c0_18, %c0_19] : memref<2x2x32xf32, #tpu.memory_space<vmem>>, vector<1x2x32xf32>
    %41 = vector.shape_cast %40 : vector<1x2x32xf32> to vector<2x32xf32>
    %42 = vector.shape_cast %38 : vector<2x32xf32> to vector<1x2x32xf32>
    tpu.vector_store %arg8[%39, %c0_18, %c0_19], %42 {strides = array<i32>} : memref<2x2x32xf32, #tpu.memory_space<vmem>>, vector<1x2x32xf32>,
    %c1_i32 = arith.constant 1 : i32
    %43 = arith.index_cast %c1_i32 : i32 to index
    %c0_20 = arith.constant 0 : index
    %c0_21 = arith.constant 0 : index
    %44 = vector.load %arg2[%43, %c0_20, %c0_21] : memref<2x2x32xf32, #tpu.memory_space<vmem>>, vector<1x2x32xf32>
    %45 = vector.shape_cast %44 : vector<1x2x32xf32> to vector<2x32xf32>
    %cst_22 = arith.constant dense<0.000000e+00> : vector<2x32xf32>
    %46 = tpu.matmul %38, %4, %cst_22 {dimension_numbers = #tpu.dot_dimension_numbers<[1], [0], [0], [1], [0, 0, 1, 1], [], []>} : vector<2x32xf32>, vector<32x32xf32>, vector<2x32xf32> -> vector<2x32xf32>
    %47 = arith.addf %45, %46 : vector<2x32xf32>
    %48 = math.tanh %47 : vector<2x32xf32>
    %49 = vector.broadcast %3 : f32 to vector<2x32xf32>
    %50 = arith.mulf %49, %48 : vector<2x32xf32>
    %51 = vector.extract_strided_slice %50 {offsets = [0, 0], sizes = [2, 16], strides = [1, 1]} : vector<2x32xf32> to vector<2x16xf32>
    %52 = arith.negf %51 : vector<2x16xf32>
    %53 = math.exp %52 : vector<2x16xf32>
    %cst_23 = arith.constant 1.000000e+00 : f32
    %54 = vector.broadcast %cst_23 : f32 to vector<2x16xf32>
    %55 = arith.addf %54, %53 : vector<2x16xf32>
    %56 = arith.divf %54, %55 : vector<2x16xf32>
    %57 = vector.extract_strided_slice %50 {offsets = [0, 16], sizes = [2, 16], strides = [1, 1]} : vector<2x32xf32> to vector<2x16xf32>
    %58 = arith.negf %57 : vector<2x16xf32>
    %59 = math.exp %58 : vector<2x16xf32>
    %cst_24 = arith.constant 1.000000e+00 : f32
    %60 = vector.broadcast %cst_24 : f32 to vector<2x16xf32>
    %61 = arith.addf %60, %59 : vector<2x16xf32>
    %62 = arith.divf %60, %61 : vector<2x16xf32>
    %63 = arith.addf %56, %62 : vector<2x16xf32>
    %cst_25 = arith.constant 2.000000e+00 : f32
    %64 = vector.broadcast %cst_25 : f32 to vector<2x16xf32>
    %65 = arith.mulf %64, %56 : vector<2x16xf32>
    %66 = arith.mulf %65, %62 : vector<2x16xf32>
    %67 = arith.subf %63, %66 : vector<2x16xf32>
    %cst_26 = arith.constant 5.000000e-01 : f32
    %68 = vector.broadcast %cst_26 : f32 to vector<2x16xf32>
    %69 = arith.mulf %68, %67 : vector<2x16xf32>
    %cst_27 = arith.constant dense<0.000000e+00> : vector<2x32xf32>
    %70 = tpu.matmul %69, %5, %cst_27 {dimension_numbers = #tpu.dot_dimension_numbers<[1], [0], [0], [1], [0, 0, 1, 1], [], []>} : vector<2x16xf32>, vector<16x32xf32>, vector<2x32xf32> -> vector<2x32xf32>
    %71 = vector.broadcast %6 : vector<1x32xf32> to vector<2x32xf32>
    %72 = arith.addf %70, %71 : vector<2x32xf32>
    %73 = arith.addf %50, %72 : vector<2x32xf32>
    %74 = arith.index_cast %c1_i32 : i32 to index
    %c0_28 = arith.constant 0 : index
    %c0_29 = arith.constant 0 : index
    %75 = vector.load %arg8[%74, %c0_28, %c0_29] : memref<2x2x32xf32, #tpu.memory_space<vmem>>, vector<1x2x32xf32>
    %76 = vector.shape_cast %75 : vector<1x2x32xf32> to vector<2x32xf32>
    %77 = vector.shape_cast %73 : vector<2x32xf32> to vector<1x2x32xf32>
    tpu.vector_store %arg8[%74, %c0_28, %c0_29], %77 {strides = array<i32>} : memref<2x2x32xf32, #tpu.memory_space<vmem>>, vector<1x2x32xf32>,
    %c2_i32 = arith.constant 2 : i32
    %c0_30 = arith.constant 0 : index
    %c0_31 = arith.constant 0 : index
    %78 = vector.load %arg9[%c0_30, %c0_31] : memref<2x32xf32, #tpu.memory_space<vmem>>, vector<2x32xf32>
    tpu.vector_store %arg9[%c0_30, %c0_31], %73 {strides = array<i32>} : memref<2x32xf32, #tpu.memory_space<vmem>>, vector<2x32xf32>,
    return
  }
  func.func @transform_0(%arg0: i32, %arg1: i32) -> (i32, i32, i32) {
    %c0_i32 = arith.constant 0 : i32
    %c0_i32_0 = arith.constant 0 : i32
    return %arg1, %arg0, %c0_i32 : i32, i32, i32
  }
  func.func @transform_1(%arg0: i32, %arg1: i32) -> (i32, i32) {
    %c0_i32 = arith.constant 0 : i32
    %c0_i32_0 = arith.constant 0 : i32
    return %arg0, %c0_i32 : i32, i32
  }
  func.func @transform_2(%arg0: i32, %arg1: i32) -> (i32, i32) {
    %c0_i32 = arith.constant 0 : i32
    %c0_i32_0 = arith.constant 0 : i32
    %c0_i32_1 = arith.constant 0 : i32
    return %c0_i32, %c0_i32_0 : i32, i32
  }
  func.func @transform_3(%arg0: i32, %arg1: i32) -> (i32, i32) {
    %c0_i32 = arith.constant 0 : i32
    %c0_i32_0 = arith.constant 0 : i32
    %c0_i32_1 = arith.constant 0 : i32
    return %c0_i32, %c0_i32_0 : i32, i32
  }
  func.func @transform_4(%arg0: i32, %arg1: i32) -> (i32, i32) {
    %c0_i32 = arith.constant 0 : i32
    %c0_i32_0 = arith.constant 0 : i32
    %c0_i32_1 = arith.constant 0 : i32
    return %c0_i32, %c0_i32_0 : i32, i32
  }
  func.func @transform_5(%arg0: i32, %arg1: i32) -> (i32, i32) {
    %c0_i32 = arith.constant 0 : i32
    %c0_i32_0 = arith.constant 0 : i32
    %c0_i32_1 = arith.constant 0 : i32
    return %c0_i32, %c0_i32_0 : i32, i32
  }
  func.func @transform_6(%arg0: i32, %arg1: i32) -> (i32, i32, i32) {
    %c0_i32 = arith.constant 0 : i32
    %c0_i32_0 = arith.constant 0 : i32
    return %arg1, %arg0, %c0_i32 : i32, i32, i32
  }
}

module attributes {stable_mosaic.version = 11 : i64} {
  func.func @_recurrent_kernel(%arg0: i32, %arg1: i32, %arg2: memref<2x2x32xf32, #tpu.memory_space<vmem>>, %arg3: memref<2x32xf32, #tpu.memory_space<vmem>>, %arg4: memref<32x32xf32, #tpu.memory_space<vmem>>, %arg5: memref<16x32xf32, #tpu.memory_space<vmem>>, %arg6: memref<1x32xf32, #tpu.memory_space<vmem>>, %arg7: memref<1x1xf32, #tpu.memory_space<vmem>>, %arg8: memref<2x2x32xf32, #tpu.memory_space<vmem>>, %arg9: memref<2x32xf32, #tpu.memory_space<vmem>>) attributes {dimension_semantics = [#tpu.dimension_semantics<parallel>, #tpu.dimension_semantics<arbitrary>], iteration_bounds = array<i64: 1, 4>, scalar_prefetch = 0 : i64, scratch_operands = 1 : i64, tpu.core_type = #tpu.core_type<tc>, window_params = [{transform_indices = @transform_0, window_bounds = array<i64: 2, 2, 32>}, {transform_indices = @transform_1, window_bounds = array<i64: 2, 32>}, {pipeline_mode = #tpu.pipeline_mode<synchronous>, transform_indices = @transform_2, window_bounds = array<i64: 32, 32>}, {pipeline_mode = #tpu.pipeline_mode<synchronous>, transform_indices = @transform_3, window_bounds = array<i64: 16, 32>}, {pipeline_mode = #tpu.pipeline_mode<synchronous>, transform_indices = @transform_4, window_bounds = array<i64: 1, 32>}, {pipeline_mode = #tpu.pipeline_mode<synchronous>, transform_indices = @transform_5, window_bounds = array<i64: 1, 1>}, {transform_indices = @transform_6, window_bounds = array<i64: 2, 2, 32>}]} {
    %c0_i32 = arith.constant 0 : i32
    %0 = arith.cmpi eq, %arg1, %c0_i32 : i32
    %1 = arith.extui %0 : i1 to i32
    %c0_i32_0 = arith.constant 0 : i32
    %2 = arith.cmpi ne, %1, %c0_i32_0 : i32
    scf.if %2 {
      %c0_32 = arith.constant 0 : index
      %c0_33 = arith.constant 0 : index
      %79 = vector.load %arg3[%c0_32, %c0_33] : memref<2x32xf32, #tpu.memory_space<vmem>>, vector<2x32xf32>
      %c0_34 = arith.constant 0 : index
      %c0_35 = arith.constant 0 : index
      %80 = vector.load %arg9[%c0_34, %c0_35] : memref<2x32xf32, #tpu.memory_space<vmem>>, vector<2x32xf32>
      tpu.vector_store %arg9[%c0_34, %c0_35], %79 {strides = array<i32>} : memref<2x32xf32, #tpu.memory_space<vmem>>, vector<2x32xf32>,
    } else {
    }
    %c0 = arith.constant 0 : index
    %c0_1 = arith.constant 0 : index
    %3 = vector.load %arg7[%c0, %c0_1] : memref<1x1xf32, #tpu.memory_space<vmem>>, vector<1x1xf32>
    %c0_2 = arith.constant 0 : index
    %c0_3 = arith.constant 0 : index
    %4 = vector.load %arg4[%c0_2, %c0_3] : memref<32x32xf32, #tpu.memory_space<vmem>>, vector<32x32xf32>
    %c0_4 = arith.constant 0 : index
    %c0_5 = arith.constant 0 : index
    %5 = vector.load %arg5[%c0_4, %c0_5] : memref<16x32xf32, #tpu.memory_space<vmem>>, vector<16x32xf32>
    %c0_6 = arith.constant 0 : index
    %c0_7 = arith.constant 0 : index
    %6 = vector.load %arg6[%c0_6, %c0_7] : memref<1x32xf32, #tpu.memory_space<vmem>>, vector<1x32xf32>
    %c0_8 = arith.constant 0 : index
    %c0_9 = arith.constant 0 : index
    %7 = vector.load %arg9[%c0_8, %c0_9] : memref<2x32xf32, #tpu.memory_space<vmem>>, vector<2x32xf32>
    %c0_i32_10 = arith.constant 0 : i32
    %8 = arith.index_cast %c0_i32_10 : i32 to index
    %c0_11 = arith.constant 0 : index
    %c0_12 = arith.constant 0 : index
    %9 = vector.load %arg2[%8, %c0_11, %c0_12] : memref<2x2x32xf32, #tpu.memory_space<vmem>>, vector<1x2x32xf32>
    %10 = vector.shape_cast %9 : vector<1x2x32xf32> to vector<2x32xf32>
    %cst = arith.constant dense<0.000000e+00> : vector<2x32xf32>
    %11 = tpu.matmul %7, %4, %cst {dimension_numbers = #tpu.dot_dimension_numbers<[1], [0], [0], [1], [0, 0, 1, 1], [], []>} : vector<2x32xf32>, vector<32x32xf32>, vector<2x32xf32> -> vector<2x32xf32>
    %12 = arith.addf %10, %11 : vector<2x32xf32>
    %13 = math.tanh %12 : vector<2x32xf32>
    %14 = vector.broadcast %3 : vector<1x1xf32> to vector<2x32xf32>
    %15 = arith.mulf %14, %13 : vector<2x32xf32>
    %16 = vector.extract_strided_slice %15 {offsets = [0, 0], sizes = [2, 16], strides = [1, 1]} : vector<2x32xf32> to vector<2x16xf32>
    %17 = arith.negf %16 : vector<2x16xf32>
    %18 = math.exp %17 : vector<2x16xf32>
    %cst_13 = arith.constant 1.000000e+00 : f32
    %19 = vector.broadcast %cst_13 : f32 to vector<2x16xf32>
    %20 = arith.addf %19, %18 : vector<2x16xf32>
    %21 = arith.divf %19, %20 : vector<2x16xf32>
    %22 = vector.extract_strided_slice %15 {offsets = [0, 16], sizes = [2, 16], strides = [1, 1]} : vector<2x32xf32> to vector<2x16xf32>
    %23 = arith.negf %22 : vector<2x16xf32>
    %24 = math.exp %23 : vector<2x16xf32>
    %cst_14 = arith.constant 1.000000e+00 : f32
    %25 = vector.broadcast %cst_14 : f32 to vector<2x16xf32>
    %26 = arith.addf %25, %24 : vector<2x16xf32>
    %27 = arith.divf %25, %26 : vector<2x16xf32>
    %28 = arith.addf %21, %27 : vector<2x16xf32>
    %cst_15 = arith.constant 2.000000e+00 : f32
    %29 = vector.broadcast %cst_15 : f32 to vector<2x16xf32>
    %30 = arith.mulf %29, %21 : vector<2x16xf32>
    %31 = arith.mulf %30, %27 : vector<2x16xf32>
    %32 = arith.subf %28, %31 : vector<2x16xf32>
    %cst_16 = arith.constant 5.000000e-01 : f32
    %33 = vector.broadcast %cst_16 : f32 to vector<2x16xf32>
    %34 = arith.mulf %33, %32 : vector<2x16xf32>
    %cst_17 = arith.constant dense<0.000000e+00> : vector<2x32xf32>
    %35 = tpu.matmul %34, %5, %cst_17 {dimension_numbers = #tpu.dot_dimension_numbers<[1], [0], [0], [1], [0, 0, 1, 1], [], []>} : vector<2x16xf32>, vector<16x32xf32>, vector<2x32xf32> -> vector<2x32xf32>
    %36 = vector.broadcast %6 : vector<1x32xf32> to vector<2x32xf32>
    %37 = arith.addf %35, %36 : vector<2x32xf32>
    %38 = arith.addf %15, %37 : vector<2x32xf32>
    %39 = arith.index_cast %c0_i32_10 : i32 to index
    %c0_18 = arith.constant 0 : index
    %c0_19 = arith.constant 0 : index
    %40 = vector.load %arg8[%39, %c0_18, %c0_19] : memref<2x2x32xf32, #tpu.memory_space<vmem>>, vector<1x2x32xf32>
    %41 = vector.shape_cast %40 : vector<1x2x32xf32> to vector<2x32xf32>
    %42 = vector.shape_cast %38 : vector<2x32xf32> to vector<1x2x32xf32>
    tpu.vector_store %arg8[%39, %c0_18, %c0_19], %42 {strides = array<i32>} : memref<2x2x32xf32, #tpu.memory_space<vmem>>, vector<1x2x32xf32>,
    %c1_i32 = arith.constant 1 : i32
    %43 = arith.index_cast %c1_i32 : i32 to index
    %c0_20 = arith.constant 0 : index
    %c0_21 = arith.constant 0 : index
    %44 = vector.load %arg2[%43, %c0_20, %c0_21] : memref<2x2x32xf32, #tpu.memory_space<vmem>>, vector<1x2x32xf32>
    %45 = vector.shape_cast %44 : vector<1x2x32xf32> to vector<2x32xf32>
    %cst_22 = arith.constant dense<0.000000e+00> : vector<2x32xf32>
    %46 = tpu.matmul %38, %4, %cst_22 {dimension_numbers = #tpu.dot_dimension_numbers<[1], [0], [0], [1], [0, 0, 1, 1], [], []>} : vector<2x32xf32>, vector<32x32xf32>, vector<2x32xf32> -> vector<2x32xf32>
    %47 = arith.addf %45, %46 : vector<2x32xf32>
    %48 = math.tanh %47 : vector<2x32xf32>
    %49 = vector.broadcast %3 : vector<1x1xf32> to vector<2x32xf32>
    %50 = arith.mulf %49, %48 : vector<2x32xf32>
    %51 = vector.extract_strided_slice %50 {offsets = [0, 0], sizes = [2, 16], strides = [1, 1]} : vector<2x32xf32> to vector<2x16xf32>
    %52 = arith.negf %51 : vector<2x16xf32>
    %53 = math.exp %52 : vector<2x16xf32>
    %cst_23 = arith.constant 1.000000e+00 : f32
    %54 = vector.broadcast %cst_23 : f32 to vector<2x16xf32>
    %55 = arith.addf %54, %53 : vector<2x16xf32>
    %56 = arith.divf %54, %55 : vector<2x16xf32>
    %57 = vector.extract_strided_slice %50 {offsets = [0, 16], sizes = [2, 16], strides = [1, 1]} : vector<2x32xf32> to vector<2x16xf32>
    %58 = arith.negf %57 : vector<2x16xf32>
    %59 = math.exp %58 : vector<2x16xf32>
    %cst_24 = arith.constant 1.000000e+00 : f32
    %60 = vector.broadcast %cst_24 : f32 to vector<2x16xf32>
    %61 = arith.addf %60, %59 : vector<2x16xf32>
    %62 = arith.divf %60, %61 : vector<2x16xf32>
    %63 = arith.addf %56, %62 : vector<2x16xf32>
    %cst_25 = arith.constant 2.000000e+00 : f32
    %64 = vector.broadcast %cst_25 : f32 to vector<2x16xf32>
    %65 = arith.mulf %64, %56 : vector<2x16xf32>
    %66 = arith.mulf %65, %62 : vector<2x16xf32>
    %67 = arith.subf %63, %66 : vector<2x16xf32>
    %cst_26 = arith.constant 5.000000e-01 : f32
    %68 = vector.broadcast %cst_26 : f32 to vector<2x16xf32>
    %69 = arith.mulf %68, %67 : vector<2x16xf32>
    %cst_27 = arith.constant dense<0.000000e+00> : vector<2x32xf32>
    %70 = tpu.matmul %69, %5, %cst_27 {dimension_numbers = #tpu.dot_dimension_numbers<[1], [0], [0], [1], [0, 0, 1, 1], [], []>} : vector<2x16xf32>, vector<16x32xf32>, vector<2x32xf32> -> vector<2x32xf32>
    %71 = vector.broadcast %6 : vector<1x32xf32> to vector<2x32xf32>
    %72 = arith.addf %70, %71 : vector<2x32xf32>
    %73 = arith.addf %50, %72 : vector<2x32xf32>
    %74 = arith.index_cast %c1_i32 : i32 to index
    %c0_28 = arith.constant 0 : index
    %c0_29 = arith.constant 0 : index
    %75 = vector.load %arg8[%74, %c0_28, %c0_29] : memref<2x2x32xf32, #tpu.memory_space<vmem>>, vector<1x2x32xf32>
    %76 = vector.shape_cast %75 : vector<1x2x32xf32> to vector<2x32xf32>
    %77 = vector.shape_cast %73 : vector<2x32xf32> to vector<1x2x32xf32>
    tpu.vector_store %arg8[%74, %c0_28, %c0_29], %77 {strides = array<i32>} : memref<2x2x32xf32, #tpu.memory_space<vmem>>, vector<1x2x32xf32>,
    %c2_i32 = arith.constant 2 : i32
    %c0_30 = arith.constant 0 : index
    %c0_31 = arith.constant 0 : index
    %78 = vector.load %arg9[%c0_30, %c0_31] : memref<2x32xf32, #tpu.memory_space<vmem>>, vector<2x32xf32>
    tpu.vector_store %arg9[%c0_30, %c0_31], %73 {strides = array<i32>} : memref<2x32xf32, #tpu.memory_space<vmem>>, vector<2x32xf32>,
    return
  }
  func.func @transform_0(%arg0: i32, %arg1: i32) -> (i32, i32, i32) {
    %c0_i32 = arith.constant 0 : i32
    %c0_i32_0 = arith.constant 0 : i32
    return %arg1, %arg0, %c0_i32 : i32, i32, i32
  }
  func.func @transform_1(%arg0: i32, %arg1: i32) -> (i32, i32) {
    %c0_i32 = arith.constant 0 : i32
    %c0_i32_0 = arith.constant 0 : i32
    return %arg0, %c0_i32 : i32, i32
  }
  func.func @transform_2(%arg0: i32, %arg1: i32) -> (i32, i32) {
    %c0_i32 = arith.constant 0 : i32
    %c0_i32_0 = arith.constant 0 : i32
    %c0_i32_1 = arith.constant 0 : i32
    return %c0_i32, %c0_i32_0 : i32, i32
  }
  func.func @transform_3(%arg0: i32, %arg1: i32) -> (i32, i32) {
    %c0_i32 = arith.constant 0 : i32
    %c0_i32_0 = arith.constant 0 : i32
    %c0_i32_1 = arith.constant 0 : i32
    return %c0_i32, %c0_i32_0 : i32, i32
  }
  func.func @transform_4(%arg0: i32, %arg1: i32) -> (i32, i32) {
    %c0_i32 = arith.constant 0 : i32
    %c0_i32_0 = arith.constant 0 : i32
    %c0_i32_1 = arith.constant 0 : i32
    return %c0_i32, %c0_i32_0 : i32, i32
  }
  func.func @transform_5(%arg0: i32, %arg1: i32) -> (i32, i32) {
    %c0_i32 = arith.constant 0 : i32
    %c0_i32_0 = arith.constant 0 : i32
    %c0_i32_1 = arith.constant 0 : i32
    return %c0_i32, %c0_i32_0 : i32, i32
  }
  func.func @transform_6(%arg0: i32, %arg1: i32) -> (i32, i32, i32) {
    %c0_i32 = arith.constant 0 : i32
    %c0_i32_0 = arith.constant 0 : i32
    return %arg1, %arg0, %c0_i32 : i32, i32, i32
  }
}

</mosaic_0001>

<bundles_post_ra>
// kernel: tpu_custom_call.1
= control target key start
LH: loop header
LB: loop body
LE: loop exit
PB: predicated region body
PF: predicated region fallthrough
CT: control target
= control target key end

     0   :  { %s1456_s0 = inlined_call_operand.hbm [shape: f32[8,2,32], index: 0, kind: input, shape index: {}]   ;;  %s1457_s1 = inlined_call_operand.vmem [shape: f32[2,32], index: 1, kind: input, shape index: {}]   ;;  %s1458_s2 = inlined_call_operand.hbm [shape: f32[32,32], index: 2, kind: input, shape index: {}]   ;;  %s1459_s3 = inlined_call_operand.hbm [shape: f32[16,32], index: 3, kind: input, shape index: {}]   ;;  %s1460_s4 = inlined_call_operand.vmem [shape: f32[1,32], index: 4, kind: input, shape index: {}]   ;;  %s1461_s5 = inlined_call_operand.<no memory space> [shape: f32[1,1], index: 5, kind: input, shape index: {}]   ;;  %s1462_s6 = inlined_call_operand.hbm [shape: f32[8,2,32], index: 6, kind: output, shape index: {}]  }
   0x1   :  { %1466 = sst [smem:[#allocation14_spill]] %s1458_s2 }
   0x2   :  { %11 = sst [smem:[#allocation3]] %s1461_s5 }
   0x3   :  { %12 = vsyncpa [#allocation5], 0 }
   0x4   :  { %14 = vsyncpa [#allocation5 + $0x1], 0 }
   0x5   :  { %15 = vsyncpa [#allocation8], 0 }
   0x6   :  { %16 = vsyncpa [#allocation6], 0 }
   0x7   :  { %18 = vsyncpa [#allocation6 + $0x1], 0  ;;  %s1238_s23 = smov 0   ;;  %s1240_s24 = smov 0  }
   0x8   :  { %s1242_s25 = smov 0   ;;  %s1244_s26 = smov 0  }
   0x9   :  { %s1246_s27 = smov 0   ;;  %s1248_s28 = smov 0  }
   0xa LB: > { %s833_s5 = sadd.s32 4294967295, %s1185_s28   ;;  %s834_s29 = sadd.s32 4294967294, %s1185_s28   ;;  %s1185_s28 = sphi %s1248_s28, %s24_s28   ;;  %s1181_s27 = sphi %s1246_s27, %s1483_s27   ;;  %s1177_s26 = sphi %s1244_s26, %s1482_s26   ;;  %s1173_s25 = sphi %s1242_s25, %s1481_s25   ;;  %s1169_s24 = sphi %s1240_s24, %s1480_s24   ;;  %s1165_s23 = sphi %s1238_s23, %s1479_s23  }
   0xb   : > { %p58_p0 = scmp.ne.s32.totalorder %s1169_s24, %s1165_s23  ;;  %p1272_p1 = scmp.eq.s32.totalorder %s833_s5, 0 }
   0xc   : > { %p1276_p2 = scmp.eq.s32.totalorder %s833_s5, 3  ;;  %p200_p3 = scmp.eq.s32.totalorder %s834_s29, 3 }
   0xd   : > { %s1467_s30 = scalar_select %p1272_p1, 1, 0 }
   0xe   : > { %p1282_p4 = por %p1272_p1, %p58_p0  ;;  %p835_p5 = scmp.ge.s32.totalorder %s1185_s28, 1 }
   0xf   : > { %p1287_p6 = por %p200_p3, %p58_p0  ;;  %p207_p7 = scmp.lt.s32.totalorder %s1185_s28, 5 }
  0x10   : > { %s1469_s8 = scalar_select %p1282_p4, 1, 0 }
  0x11   : > { %s1470_s9 = scalar_select %p1287_p6, 1, 0 }
  0x12   : > { %p1292_p8 = pnand %p835_p5, %p207_p7  ;;  %s1187_s11 = smov [#allocation7]  }
  0x13   : > { %s226_s12 = sshll.u32 %s1187_s11, 4  ;;  %s1188_s14 = smov [#allocation9]   ;;  %s227_s12 = int_to_ptr.vmem [resolvable:$true] %s226_s12 }
  0x14   : > { %p929_p9 = pneg %p1292_p8  ;;  %s239_s15 = sshll.u32 %s1188_s14, 4  ;;  %s240_s15 = int_to_ptr.vmem [resolvable:$true] %s239_s15 }
  0x15   : > { %s1032_s16 = scalar_lea.vmem %s227_s12, 512  ;;  %p1040_p3 = scmp.lt.s32.totalorder %s227_s12, %s227_s12 }
  0x16   : > { %p1300_p10 = pnand %p929_p9, %p1272_p1  ;;  %p1033_p12 = scmp.ne.s32.totalorder %s227_s12, %s1032_s16 }
  0x17   : > { %p1041_p5 = scmp.lt.s32.totalorder %s1032_s16, %s1032_s16 }
  0x18   : > { %p1023_p11 = pneg %p1300_p10 }
  0x19   : > { %p1042_p7 = por %p1041_p5, %p1040_p3 }
  0x1a   : > { %p1035_p13 = pnand %p1033_p12, %p1023_p11 }
  0x1c   : > { %p1036_p0 = pneg %p1035_p13 }
  0x1e   : > { %p1043_p9 = pnand %p1042_p7, %p1036_p0 }
  0x20   : > { %1046 = shalt.err (!%p1043_p9)
}
  0x21   : > { %s1189_s17 = smov 128   ;;  %s1190_s18 = smov 8  }
  0x22   : > { %s1473_s2 = sld [smem:[#allocation14_spill]]  ;;  %s1058_s21 = scalar_lea.vmem %s240_s15, 256 }
  0x23   : > { %p1059_p6 = scmp.ne.s32.totalorder %s240_s15, %s1058_s21  ;;  %p1066_p1 = scmp.lt.s32.totalorder %s240_s15, %s240_s15 }
  0x24   : > { %p1067_p4 = scmp.lt.s32.totalorder %s1058_s21, %s1058_s21 }
  0x25   : > { %p1061_p12 = pnand %p1059_p6, %p1023_p11 }
  0x26   : > { %p1068_p3 = por %p1067_p4, %p1066_p1 }
  0x27   : > { %p1062_p13 = pneg %p1061_p12 }
  0x28   : > { %932 = dma.hbm_to_vmem [thread:$0]  (!%p1300_p10), %s1473_s2, 512, %s227_s12, [#allocation8], %s1189_s17, %s1189_s17, %s1190_s18  }
  0x29   : > { %p1069_p0 = pnand %p1068_p3, %p1062_p13 }
  0x2b   : > { %1072 = shalt.err (!%p1069_p0)
}
  0x2c   : > { %935 = dma.hbm_to_vmem [thread:$0]  (!%p1300_p10), %s1459_s3, 256, %s240_s15, [#allocation8], %s1189_s17, %s1189_s17, %s1190_s18  }
  0x2d   : > { %s33_s29 = sadd.s32 1, %s1181_s27  ;;  %s45_s11 = sadd.s32 1, %s1173_s25 }
  0x2e   : > { %p34_p1 = scmp.ge.s32.totalorder %s33_s29, 4  ;;  %p52_p4 = scmp.ne.s32.totalorder %s1173_s25, %s1169_s24 }
  0x2f   : > { %p53_p6 = scmp.eq.s32.totalorder %s1185_s28, 0  ;;  %p946_p11 = scmp.lt.s32.totalorder %s1185_s28, 4 }
  0x30   : > { %s1485_s29 = smov (%p34_p1, %s33_s29), 0  ;;  %p1332_p7 = por %p1276_p2, %p52_p4 }
  0x31   : > { %p54_p5 = por %p53_p6, %p52_p4  ;;  %s40_s13 = ssub.s32 %s1181_s27, %s1485_s29 }
  0x32   : > { %s259_s14 = sand.u32 1, %s1173_s25   ;;  %p43_p9 = scmp.eq.s32.totalorder %s40_s13, 0 }
  0x33   : > { %s840_s15 = sshll.u32 %s259_s14, 2  ;;  %s863_s16 = sshll.u32 %s1181_s27, 6 }
  0x34   : > { %s1341_s17 = scalar_select %p43_p9, %s1173_s25, %s45_s11  }
  0x35   : > { %s270_s20 = scalar_lea.hbm %s1456_s0, %s863_s16  ;;  %s263_s21 = scalar_lea.vmem [#allocation4], %s840_s15 }
  0x36   : > { %s271_s22 = sshll.u32 %s263_s21, 4  ;;  %p1348_p10 = pnand %p946_p11, %p54_p5  ;;  %s272_s22 = int_to_ptr.vmem [resolvable:$true] %s271_s22 }
  0x37   : > { %s260_s5 = scalar_lea.sflag [#allocation5], %s259_s14  ;;  %s1086_s13 = scalar_lea.vmem %s272_s22, 64 }
  0x38   : > { %p1075_p2 = pneg %p1348_p10  ;;  %p1087_p12 = scmp.ne.s32.totalorder %s272_s22, %s1086_s13 }
  0x39   : > { %s1191_s11 = smov [#allocation4]  }
  0x3a   : > { %p1089_p13 = pnand %p1087_p12, %p1075_p2  ;;  %s1091_s2 = sshll.u32 %s1191_s11, 4  ;;  %s1092_s2 = int_to_ptr.vmem [resolvable:$false] %s1091_s2 }
  0x3b   : > { %s1093_s16 = scalar_lea.vmem %s1092_s2, 128  ;;  %p1094_p0 = scmp.lt.s32.totalorder %s272_s22, %s1092_s2 }
  0x3c   : > { %p1090_p3 = pneg %p1089_p13  ;;  %p1095_p1 = scmp.lt.s32.totalorder %s1093_s16, %s1086_s13 }
  0x3e   : > { %p1096_p4 = por %p1095_p1, %p1094_p0 }
  0x40   : > { %p1097_p6 = pnand %p1096_p4, %p1090_p3 }
  0x42   : > { %1100 = shalt.err (!%p1097_p6)
}
  0x43   : > { %s1192_s15 = smov 32   ;;  %s1193_s18 = smov 2  }
  0x44   : > { %939 = dma.hbm_to_vmem [thread:$0]  (!%p1348_p10), %s270_s20, 64, %s272_s22, %s260_s5, %s1192_s15, %s1192_s15, %s1193_s18  }
  0x45   : > { %283 = sbr.rel (%p1292_p8) target bundleno = 1232 (0x4d0), region = 44  ;;  %s1359_s14 = sand.u32 (!%p1292_p8), 1, %s1169_s24  }
  0x46   : > { %s844_s19 = sshll.u32 (!%p1292_p8), %s1359_s14, 2  ;;  %s286_s2 = scalar_lea.sflag (!%p1292_p8), [#allocation5], %s1359_s14 }
  0x47   : > { %s1363_s21 = scalar_lea.vmem (!%p1292_p8), [#allocation4], %s844_s19  ;;  %p1476_p11 = scmp.ne.s32.totalorder (!%p1292_p8), %s1469_s8, 0 }
  0x4a   : > { %1152 = dma.done.wait (%p1476_p11), %s286_s2, 64  }
  0x4b   : > { %1154 = vsyncadd (%p1476_p11), %s286_s2, 4294967232  ;;  %p1477_p5 = scmp.ne.s32.totalorder %s1467_s30, 0 }
  0x4d   : > { %1156 = dma.done.wait (%p1477_p5), [#allocation8], 768  }
  0x4e   : > { %1158 = vsyncadd (%p1477_p5), [#allocation8], 4294966528  ;;  %s1373_s10 = scalar_lea.vmem [#allocation10], %s844_s19  ;;  %p848_p8 = scmp.ne.s32.totalorder %s1177_s26, 0 }
  0x50   : > { %339 = sbr.rel (%p848_p8) target bundleno = 87 (0x57), region = 60 }
  0x55   : > { %v340_v0 = vld [vmem:[%s1457_s1] sm:$0x3]  ;;  %vm341_vm0 = vcmask 254976  }
  0x56   : > { %342 = vst.msk [vmem:[#allocation2] sm:$0x3] %vm341_vm0, %v340_v0 }
  0x57 PF: > { %v347_v1 = vld [vmem:[#allocation7 + $0x18] sm:$0xff]  ;;  %v1194_v2 = vmov 0.0   ;;  %v346_v3 = vld [vmem:[#allocation7 + $0x10] sm:$0xff]  ;;  %vm1195_vm1 = vmmov 0   ;;  %v345_v4 = vld [vmem:[#allocation7 + $0x8] sm:$0xff]  ;;  %vm353_vm2 = vcmask 261120  }
  0x58   : > { %881 = vmatprep.subr.mxu0 %v1194_v2  ;;  %889 = vmatprep.mubr.msk.f32.mxu0 %vm1195_vm1, %v1194_v2  ;;  %v344_v5 = vld [vmem:[#allocation7] sm:$0xff]  ;;  %v352_v7 = vld [vmem:[%s1363_s21] sm:$0x3]  ;;  %s1384_s30 = sld [smem:[#allocation3]]  ;;  %v349_v17 = vld [vmem:[#allocation9 + $0x8] sm:$0xff]  ;;  %s1196_s8 = smov 112  }
  0x59   : > { %882 = vmatpush3.msra.mxu0 %v347_v1  ;;  %892 = vmatprep.subr.mxu1 %v1194_v2  ;;  %v348_v18 = vld [vmem:[#allocation9] sm:$0xff]  ;;  %vm452_vm3 = vcmask 130048   ;;  %v851_v26 = vld [vmem:[%s1460_s4] ss:$0 sm:$0xff]  ;;  %vm527_vm4 = vcmask 254976   ;;  %s864_s13 = sshll.u32 %s1177_s26, 6 }
  0x5a   : > { %883 = vmatprep.subr.mxu0 %v1194_v2  ;;  %896 = vmatprep.mubr.msk.f32.mxu1 %vm1195_vm1, %v1194_v2  ;;  %v853_v31 = vld [vmem:[%s1363_s21 + $0x2] sm:$0x3]  ;;  %s714_s11 = sshll.u32 %s1373_s10, 4  ;;  %s1404_s18 = scalar_lea.hbm %s1462_s6, %s864_s13  ;;  %s1406_s11 = int_to_ptr.vmem [resolvable:$true] %s714_s11 }
  0x5b   : > { %884 = vmatpush3.msra.mxu0 %v346_v3  ;;  %893 = vmatpush3.msra.mxu1 %v349_v17  ;;  %s700_s26 = scalar_lea.sflag [#allocation6], %s1359_s14  ;;  %s1101_s19 = scalar_lea.vmem %s1406_s11, 64 }
  0x5c   : > { %885 = vmatprep.subr.mxu0 %v1194_v2  ;;  %894 = vmatprep.subr.mxu1 %v1194_v2  ;;  %p1102_p9 = scmp.ne.s32.totalorder %s1406_s11, %s1101_s19  ;;  %s1197_s2 = smov [#allocation10]  }
  0x5d   : > { %886 = vmatpush3.msra.mxu0 %v345_v4  ;;  %v351_v6 = vld [vmem:[#allocation2] sm:$0x3]  ;;  %895 = vmatpush3.msra.mxu1 %v348_v18  ;;  %s1105_s21 = sshll.u32 %s1197_s2, 4  ;;  %s1106_s21 = int_to_ptr.vmem [resolvable:$false] %s1105_s21 }
  0x5e   : > { %887 = vmatprep.subr.mxu0 %v1194_v2  ;;  %v429_v11 = vstv %s1384_s30  ;;  %899 = vmatprep.subr.mxu1 %v1194_v2  ;;  %p1103_p10 = pnand %p1102_p9, %p1332_p7  ;;  %s1107_s20 = scalar_lea.vmem %s1106_s21, 128 }
  0x5f   : > { %888 = vmatpush3.msra.mxu0 %v344_v5  ;;  %p1108_p12 = scmp.lt.s32.totalorder %s1406_s11, %s1106_s21  ;;  %p1109_p13 = scmp.lt.s32.totalorder %s1107_s20, %s1101_s19 }
  0x60   : > { %890 = vmatmul.mubr.msk.f32.vlgmr.msra.gmra.mxu0 %vm353_vm2, %v351_v6  ;;  %910 = vmatprep.subr.mxu0 %v1194_v2  ;;  %p1104_p2 = pneg %p1103_p10 }
  0x61   : > { %914 = vmatprep.mubr.msk.f32.mxu0 %vm1195_vm1, %v1194_v2  ;;  %911 = vmatpush3.msra.mxu0 %v349_v17  ;;  %p1110_p3 = por %p1109_p13, %p1108_p12 }
  0x62   : > { %912 = vmatprep.subr.mxu0 %v1194_v2 }
  0x63   : > { %913 = vmatpush3.msra.mxu0 %v348_v18  ;;  %p1111_p0 = pnand %p1110_p3, %p1104_p2 }
 0x120   : > { %v423_v8 = vpop.f32.mrf.mxu0 }
 0x121   : > { %v427_v9 = vadd.f32 %v423_v8, %v352_v7 }
 0x122   : > { %v891_v10 = vpop.f32.mrf.mxu0 }
 0x123   : > { %1009 = vtanh.f32 %v427_v9 }
 0x130   : > { %v1010_v12 = vpop.eup %1009 }
 0x131   : > { %v430_v13 = vmul.f32 %v1010_v12, %v429_v11 }
 0x133   : > { %v850_v14 = vmul.f32 -1.442695, %v430_v13 }
 0x135   : > { %1011 = vpow2.f32 %v850_v14 }
 0x142   : > { %v1012_v15 = vpop.eup %1011 }
 0x143   : > { %v434_v16 = vadd.f32 1.0, %v1012_v15 }
 0x145   : > { %1013 = vrcp.f32 %v434_v16 }
 0x152   : > { %v1014_v19 = vpop.eup %1013 }
 0x153   : > { %438 = vrot.lane.b32.xlu0 %v1014_v19, %s1196_s8  ;;  %v442_v20 = vmul.f32 2.0, %v1014_v19 }
 0x1c5   : > { %v439_v21 = vpop.permute.xlu0 %438 }
 0x1c6   : > { %v441_v22 = vadd.f32 %v1014_v19, %v439_v21  ;;  %v443_v23 = vmul.f32 %v442_v20, %v439_v21 }
 0x1c8   : > { %v444_v24 = vsub.f32 %v441_v22, %v443_v23 }
 0x1ca   : > { %v445_v25 = vmul.f32 0.5, %v444_v24 }
 0x1cc   : > { %897 = vmatmul.mubr.msk.f32.vlgmr.msra.gmra.mxu1 %vm452_vm3, %v445_v25 }
 0x1cd   : > { %900 = vmatpush3.msra.mxu1 %v347_v1  ;;  %907 = vmatprep.mubr.msk.f32.mxu1 %vm1195_vm1, %v1194_v2 }
 0x1ce   : > { %901 = vmatprep.subr.mxu1 %v1194_v2 }
 0x1cf   : > { %902 = vmatpush3.msra.mxu1 %v346_v3 }
 0x1d0   : > { %903 = vmatprep.subr.mxu1 %v1194_v2 }
 0x1d1   : > { %904 = vmatpush3.msra.mxu1 %v345_v4 }
 0x1d2   : > { %905 = vmatprep.subr.mxu1 %v1194_v2 }
 0x1d3   : > { %906 = vmatpush3.msra.mxu1 %v344_v5 }
 0x28c   : > { %v522_v27 = vpop.f32.mrf.mxu1 }
 0x28d   : > { %v523_v28 = vadd.f32 %v851_v26, %v522_v27 }
 0x28e   : > { %v898_v29 = vpop.f32.mrf.mxu1 }
 0x28f   : > { %v526_v30 = vadd.f32 %v523_v28, %v430_v13 }
 0x291   : > { %528 = vst.msk [vmem:[%s1373_s10] sm:$0x3] %vm527_vm4, %v526_v30  ;;  %908 = vmatmul.mubr.msk.f32.vlgmr.msra.gmra.mxu1 %vm353_vm2, %v526_v30 }
 0x351   : > { %v600_v32 = vpop.f32.mrf.mxu1 }
 0x352   : > { %v604_v33 = vadd.f32 %v853_v31, %v600_v32 }
 0x353   : > { %v909_v34 = vpop.f32.mrf.mxu1 }
 0x354   : > { %1015 = vtanh.f32 %v604_v33 }
 0x361   : > { %v1016_v35 = vpop.eup %1015 }
 0x362   : > { %v606_v36 = vmul.f32 %v1016_v35, %v429_v11 }
 0x364   : > { %v855_v37 = vmul.f32 -1.442695, %v606_v36 }
 0x366   : > { %1017 = vpow2.f32 %v855_v37 }
 0x373   : > { %v1018_v38 = vpop.eup %1017 }
 0x374   : > { %v610_v39 = vadd.f32 1.0, %v1018_v38 }
 0x376   : > { %1019 = vrcp.f32 %v610_v39 }
 0x383   : > { %v1020_v40 = vpop.eup %1019 }
 0x384   : > { %614 = vrot.lane.b32.xlu0 %v1020_v40, %s1196_s8  ;;  %v618_v41 = vmul.f32 2.0, %v1020_v40 }
 0x3f6   : > { %v615_v42 = vpop.permute.xlu0 %614 }
 0x3f7   : > { %v617_v43 = vadd.f32 %v1020_v40, %v615_v42  ;;  %v619_v44 = vmul.f32 %v618_v41, %v615_v42 }
 0x3f9   : > { %v620_v45 = vsub.f32 %v617_v43, %v619_v44 }
 0x3fb   : > { %v621_v46 = vmul.f32 0.5, %v620_v45 }
 0x3fd   : > { %915 = vmatmul.mubr.msk.f32.vlgmr.msra.gmra.mxu0 %vm452_vm3, %v621_v46 }
 0x4bd   : > { %v691_v47 = vpop.f32.mrf.mxu0 }
 0x4be   : > { %v692_v48 = vadd.f32 %v851_v26, %v691_v47 }
 0x4bf   : > { %v916_v49 = vpop.f32.mrf.mxu0 }
 0x4c0   : > { %v695_v50 = vadd.f32 %v692_v48, %v606_v36 }
 0x4c2   : > { %857 = vst.msk [vmem:[%s1373_s10 + $0x2] sm:$0x3] %vm527_vm4, %v695_v50  ;;  %698 = vst.msk [vmem:[#allocation2] sm:$0x3] %vm527_vm4, %v695_v50 }
 0x4c3   : > { %1114 = shalt.err (!%p1111_p0)
}
 0x4c4   : > { %s1115_s10 = scalar_lea.hbm %s1404_s18, 64  ;;  %s1119_s8 = scalar_lea.hbm %s1462_s6, 256 }
 0x4c5   : > { %p1116_p1 = scmp.ne.s32.totalorder %s1404_s18, %s1115_s10  ;;  %p1120_p11 = scmp.lt.s32.totalorder %s1404_s18, %s1462_s6 }
 0x4c6   : > { %p1121_p5 = scmp.lt.s32.totalorder %s1119_s8, %s1115_s10 }
 0x4c7   : > { %p1117_p4 = pnand %p1116_p1, %p1332_p7 }
 0x4c8   : > { %p1122_p8 = por %p1121_p5, %p1120_p11 }
 0x4c9   : > { %p1118_p6 = pneg %p1117_p4 }
 0x4cb   : > { %p1123_p9 = pnand %p1122_p8, %p1118_p6 }
 0x4cd   : > { %1126 = shalt.err (!%p1123_p9)
}
 0x4ce   : > { %s1198_s13 = smov 32   ;;  %s1199_s16 = smov 2  }
 0x4cf   : > { %927 = dma.vmem_to_hbm [thread:$0]  (%p1332_p7), %s1406_s11, 64, %s1404_s18, %s700_s26, %s1198_s13, %s1198_s13, %s1199_s16  }
 0x4d0 PF: > { %p949_p10 = scmp.ge.s32.totalorder %s1185_s28, 2  ;;  %s729_s15 = sand.u32 1, %s1165_s23  }
 0x4d1   : > { %p1478_p2 = scmp.ne.s32.totalorder %s1470_s9, 0  ;;  %s730_s19 = scalar_lea.sflag [#allocation6], %s729_s15 }
 0x4d3   : > { %p941_p12 = pnand %p949_p10, %p1478_p2 }
 0x4d5   : > { %p942_p13 = pneg %p941_p12 }
 0x4d7   : > { %1160 = dma.done.wait (%p942_p13), %s730_s19, 64  }
 0x4d8   : > { %1162 = vsyncadd (%p942_p13), %s730_s19, 4294967232  ;;  %s24_s28 = sadd.s32 1, %s1185_s28   ;;  %s1479_s23 = smov %s1169_s24 }
 0x4d9   : > { %p21_p3 = scmp.ge.s32.totalorder %s24_s28, 6   ;;  %s1480_s24 = smov %s1173_s25 }
 0x4da   : > { %s1481_s25 = smov %s1341_s17  ;;  %s1482_s26 = smov %s1181_s27 }
 0x4db   : > { %s1483_s27 = smov %s1485_s29  ;;  %23 = sbr.rel (!%p21_p3) target bundleno = 10 (0xa), region = 106 }
 0x4e0   :  { %735 = vsyncpa [#allocation5], 1 }
 0x4e1   :  { %737 = vsyncpa [#allocation5 + $0x1], 1 }
 0x4e2   :  { %738 = vsyncpa [#allocation8], 1 }
 0x4e3   :  { %739 = vsyncpa [#allocation6], 1 }
 0x4e4   :  { %741 = vsyncpa [#allocation6 + $0x1], 1 }

// kernel: tpu_custom_call.1
= control target key start
LH: loop header
LB: loop body
LE: loop exit
PB: predicated region body
PF: predicated region fallthrough
CT: control target
= control target key end

     0   :  { %s1482_s0 = inlined_call_operand.hbm [shape: f32[8,2,32], index: 0, kind: input, shape index: {}]   ;;  %s1483_s1 = inlined_call_operand.vmem [shape: f32[2,32], index: 1, kind: input, shape index: {}]   ;;  %s1484_s2 = inlined_call_operand.hbm [shape: f32[32,32], index: 2, kind: input, shape index: {}]   ;;  %s1485_s3 = inlined_call_operand.hbm [shape: f32[16,32], index: 3, kind: input, shape index: {}]   ;;  %s1486_s4 = inlined_call_operand.vmem [shape: f32[1,32], index: 4, kind: input, shape index: {}]   ;;  %s1487_s5 = inlined_call_operand.<no memory space> [shape: f32[1,1], index: 5, kind: input, shape index: {}]   ;;  %s1488_s6 = inlined_call_operand.hbm [shape: f32[8,2,32], index: 6, kind: output, shape index: {}]  }
   0x1   :  { %1492 = sst [smem:[#allocation14_spill]] %s1484_s2  ;;  %v11_v0 = vstv %s1487_s5 }
   0x2   :  { %12 = vst [vmem:[#allocation3] sm:$0x1] %v11_v0 }
   0x3   :  { %13 = vsyncpa [#allocation5], 0 }
   0x4   :  { %15 = vsyncpa [#allocation5 + $0x1], 0 }
   0x5   :  { %16 = vsyncpa [#allocation8], 0 }
   0x6   :  { %17 = vsyncpa [#allocation6], 0 }
   0x7   :  { %19 = vsyncpa [#allocation6 + $0x1], 0  ;;  %s1251_s23 = smov 0   ;;  %s1253_s24 = smov 0  }
   0x8   :  { %s1255_s25 = smov 0   ;;  %s1257_s26 = smov 0  }
   0x9   :  { %s1259_s27 = smov 0   ;;  %s1261_s28 = smov 0  }
   0xa LB: > { %s842_s5 = sadd.s32 4294967295, %s1197_s28   ;;  %s843_s29 = sadd.s32 4294967294, %s1197_s28   ;;  %s1197_s28 = sphi %s1261_s28, %s25_s28   ;;  %s1193_s27 = sphi %s1259_s27, %s1509_s27   ;;  %s1189_s26 = sphi %s1257_s26, %s1508_s26   ;;  %s1185_s25 = sphi %s1255_s25, %s1507_s25   ;;  %s1181_s24 = sphi %s1253_s24, %s1506_s24   ;;  %s1177_s23 = sphi %s1251_s23, %s1505_s23  }
   0xb   : > { %p59_p0 = scmp.ne.s32.totalorder %s1181_s24, %s1177_s23  ;;  %p1285_p1 = scmp.eq.s32.totalorder %s842_s5, 0 }
   0xc   : > { %p1289_p2 = scmp.eq.s32.totalorder %s842_s5, 3  ;;  %p201_p3 = scmp.eq.s32.totalorder %s843_s29, 3 }
   0xd   : > { %s1493_s30 = scalar_select %p1285_p1, 1, 0 }
   0xe   : > { %p1295_p4 = por %p1285_p1, %p59_p0  ;;  %p844_p5 = scmp.ge.s32.totalorder %s1197_s28, 1 }
   0xf   : > { %p1300_p6 = por %p201_p3, %p59_p0  ;;  %p208_p7 = scmp.lt.s32.totalorder %s1197_s28, 5 }
  0x10   : > { %s1495_s8 = scalar_select %p1295_p4, 1, 0 }
  0x11   : > { %s1496_s9 = scalar_select %p1300_p6, 1, 0 }
  0x12   : > { %p1305_p8 = pnand %p844_p5, %p208_p7  ;;  %s1199_s11 = smov [#allocation7]  }
  0x13   : > { %s227_s12 = sshll.u32 %s1199_s11, 4  ;;  %s1200_s14 = smov [#allocation9]   ;;  %s228_s12 = int_to_ptr.vmem [resolvable:$true] %s227_s12 }
  0x14   : > { %p939_p9 = pneg %p1305_p8  ;;  %s240_s15 = sshll.u32 %s1200_s14, 4  ;;  %s241_s15 = int_to_ptr.vmem [resolvable:$true] %s240_s15 }
  0x15   : > { %s1044_s16 = scalar_lea.vmem %s228_s12, 512  ;;  %p1052_p3 = scmp.lt.s32.totalorder %s228_s12, %s228_s12 }
  0x16   : > { %p1313_p10 = pnand %p939_p9, %p1285_p1  ;;  %p1045_p12 = scmp.ne.s32.totalorder %s228_s12, %s1044_s16 }
  0x17   : > { %p1053_p5 = scmp.lt.s32.totalorder %s1044_s16, %s1044_s16 }
  0x18   : > { %p1035_p11 = pneg %p1313_p10 }
  0x19   : > { %p1054_p7 = por %p1053_p5, %p1052_p3 }
  0x1a   : > { %p1047_p13 = pnand %p1045_p12, %p1035_p11 }
  0x1c   : > { %p1048_p0 = pneg %p1047_p13 }
  0x1e   : > { %p1055_p9 = pnand %p1054_p7, %p1048_p0 }
  0x20   : > { %1058 = shalt.err (!%p1055_p9)
}
  0x21   : > { %s1201_s17 = smov 128   ;;  %s1202_s18 = smov 8  }
  0x22   : > { %s1499_s2 = sld [smem:[#allocation14_spill]]  ;;  %s1070_s21 = scalar_lea.vmem %s241_s15, 256 }
  0x23   : > { %p1071_p6 = scmp.ne.s32.totalorder %s241_s15, %s1070_s21  ;;  %p1078_p1 = scmp.lt.s32.totalorder %s241_s15, %s241_s15 }
  0x24   : > { %p1079_p4 = scmp.lt.s32.totalorder %s1070_s21, %s1070_s21 }
  0x25   : > { %p1073_p12 = pnand %p1071_p6, %p1035_p11 }
  0x26   : > { %p1080_p3 = por %p1079_p4, %p1078_p1 }
  0x27   : > { %p1074_p13 = pneg %p1073_p12 }
  0x28   : > { %942 = dma.hbm_to_vmem [thread:$0]  (!%p1313_p10), %s1499_s2, 512, %s228_s12, [#allocation8], %s1201_s17, %s1201_s17, %s1202_s18  }
  0x29   : > { %p1081_p0 = pnand %p1080_p3, %p1074_p13 }
  0x2b   : > { %1084 = shalt.err (!%p1081_p0)
}
  0x2c   : > { %945 = dma.hbm_to_vmem [thread:$0]  (!%p1313_p10), %s1485_s3, 256, %s241_s15, [#allocation8], %s1201_s17, %s1201_s17, %s1202_s18  }
  0x2d   : > { %s34_s29 = sadd.s32 1, %s1193_s27  ;;  %s46_s11 = sadd.s32 1, %s1185_s25 }
  0x2e   : > { %p35_p1 = scmp.ge.s32.totalorder %s34_s29, 4  ;;  %p53_p4 = scmp.ne.s32.totalorder %s1185_s25, %s1181_s24 }
  0x2f   : > { %p54_p6 = scmp.eq.s32.totalorder %s1197_s28, 0  ;;  %p956_p11 = scmp.lt.s32.totalorder %s1197_s28, 4 }
  0x30   : > { %s1511_s29 = smov (%p35_p1, %s34_s29), 0  ;;  %p1345_p7 = por %p1289_p2, %p53_p4 }
  0x31   : > { %p55_p5 = por %p54_p6, %p53_p4  ;;  %s41_s13 = ssub.s32 %s1193_s27, %s1511_s29 }
  0x32   : > { %s260_s14 = sand.u32 1, %s1185_s25   ;;  %p44_p9 = scmp.eq.s32.totalorder %s41_s13, 0 }
  0x33   : > { %s849_s15 = sshll.u32 %s260_s14, 2  ;;  %s873_s16 = sshll.u32 %s1193_s27, 6 }
  0x34   : > { %s1354_s17 = scalar_select %p44_p9, %s1185_s25, %s46_s11  }
  0x35   : > { %s271_s20 = scalar_lea.hbm %s1482_s0, %s873_s16  ;;  %s264_s21 = scalar_lea.vmem [#allocation4], %s849_s15 }
  0x36   : > { %s272_s22 = sshll.u32 %s264_s21, 4  ;;  %p1361_p10 = pnand %p956_p11, %p55_p5  ;;  %s273_s22 = int_to_ptr.vmem [resolvable:$true] %s272_s22 }
  0x37   : > { %s261_s5 = scalar_lea.sflag [#allocation5], %s260_s14  ;;  %s1098_s13 = scalar_lea.vmem %s273_s22, 64 }
  0x38   : > { %p1087_p2 = pneg %p1361_p10  ;;  %p1099_p12 = scmp.ne.s32.totalorder %s273_s22, %s1098_s13 }
  0x39   : > { %s1203_s11 = smov [#allocation4]  }
  0x3a   : > { %p1101_p13 = pnand %p1099_p12, %p1087_p2  ;;  %s1103_s2 = sshll.u32 %s1203_s11, 4  ;;  %s1104_s2 = int_to_ptr.vmem [resolvable:$false] %s1103_s2 }
  0x3b   : > { %s1105_s16 = scalar_lea.vmem %s1104_s2, 128  ;;  %p1106_p0 = scmp.lt.s32.totalorder %s273_s22, %s1104_s2 }
  0x3c   : > { %p1102_p3 = pneg %p1101_p13  ;;  %p1107_p1 = scmp.lt.s32.totalorder %s1105_s16, %s1098_s13 }
  0x3e   : > { %p1108_p4 = por %p1107_p1, %p1106_p0 }
  0x40   : > { %p1109_p6 = pnand %p1108_p4, %p1102_p3 }
  0x42   : > { %1112 = shalt.err (!%p1109_p6)
}
  0x43   : > { %s1204_s15 = smov 32   ;;  %s1205_s18 = smov 2  }
  0x44   : > { %949 = dma.hbm_to_vmem [thread:$0]  (!%p1361_p10), %s271_s20, 64, %s273_s22, %s261_s5, %s1204_s15, %s1204_s15, %s1205_s18  }
  0x45   : > { %284 = sbr.rel (%p1305_p8) target bundleno = 1232 (0x4d0), region = 44  ;;  %s1372_s14 = sand.u32 (!%p1305_p8), 1, %s1181_s24  }
  0x46   : > { %s853_s19 = sshll.u32 (!%p1305_p8), %s1372_s14, 2  ;;  %s287_s2 = scalar_lea.sflag (!%p1305_p8), [#allocation5], %s1372_s14 }
  0x47   : > { %s1376_s21 = scalar_lea.vmem (!%p1305_p8), [#allocation4], %s853_s19  ;;  %p1502_p11 = scmp.ne.s32.totalorder (!%p1305_p8), %s1495_s8, 0 }
  0x4a   : > { %1164 = dma.done.wait (%p1502_p11), %s287_s2, 64  }
  0x4b   : > { %1166 = vsyncadd (%p1502_p11), %s287_s2, 4294967232  ;;  %p1503_p5 = scmp.ne.s32.totalorder %s1493_s30, 0 }
  0x4d   : > { %1168 = dma.done.wait (%p1503_p5), [#allocation8], 768  }
  0x4e   : > { %1170 = vsyncadd (%p1503_p5), [#allocation8], 4294966528  ;;  %s1386_s10 = scalar_lea.vmem [#allocation10], %s853_s19  ;;  %p857_p8 = scmp.ne.s32.totalorder %s1189_s26, 0 }
  0x50   : > { %340 = sbr.rel (%p857_p8) target bundleno = 87 (0x57), region = 60 }
  0x55   : > { %v341_v1 = vld [vmem:[%s1483_s1] sm:$0x3]  ;;  %vm342_vm0 = vcmask 254976  }
  0x56   : > { %343 = vst.msk [vmem:[#allocation2] sm:$0x3] %vm342_vm0, %v341_v1 }
  0x57 PF: > { %v348_v2 = vld [vmem:[#allocation7 + $0x18] sm:$0xff]  ;;  %v1206_v3 = vmov 0.0   ;;  %v347_v4 = vld [vmem:[#allocation7 + $0x10] sm:$0xff]  ;;  %vm1207_vm1 = vmmov 0   ;;  %v1208_v6 = vmov 0   ;;  %v346_v7 = vld [vmem:[#allocation7 + $0x8] sm:$0xff] }
  0x58   : > { %891 = vmatprep.subr.mxu0 %v1206_v3  ;;  %899 = vmatprep.mubr.msk.f32.mxu0 %vm1207_vm1, %v1206_v3  ;;  %v859_v5 = vld [vmem:[#allocation3] ss:$0 sm:$0xff]  ;;  %v345_v8 = vld [vmem:[#allocation7] sm:$0xff]  ;;  %vm354_vm2 = vcmask 261120   ;;  %v353_v10 = vld [vmem:[%s1376_s21] sm:$0x3] }
  0x59   : > { %892 = vmatpush3.msra.mxu0 %v348_v2  ;;  %1020 = vset.pattern.permute.xlu0 %v1208_v6  ;;  %v350_v20 = vld [vmem:[#allocation9 + $0x8] sm:$0xff]  ;;  %v349_v21 = vld [vmem:[#allocation9] sm:$0xff]  ;;  %s1209_s30 = smov 112   ;;  %vm461_vm3 = vcmask 130048   ;;  %v861_v29 = vld [vmem:[%s1486_s4] ss:$0 sm:$0xff] }
  0x5a   : > { %893 = vmatprep.subr.mxu0 %v1206_v3  ;;  %436 = vperm.xlu0 %1020, %v859_v5   ;;  %vm536_vm4 = vcmask 254976   ;;  %v863_v34 = vld [vmem:[%s1376_s21 + $0x2] sm:$0x3]  ;;  %s874_s5 = sshll.u32 %s1189_s26, 6  ;;  %s723_s13 = sshll.u32 %s1386_s10, 4  ;;  %s1432_s13 = int_to_ptr.vmem [resolvable:$true] %s723_s13 }
  0x5b   : > { %894 = vmatpush3.msra.mxu0 %v347_v4  ;;  %902 = vmatprep.subr.mxu1 %v1206_v3  ;;  %s1430_s15 = scalar_lea.hbm %s1488_s6, %s874_s5  ;;  %s709_s26 = scalar_lea.sflag [#allocation6], %s1372_s14 }
  0x5c   : > { %895 = vmatprep.subr.mxu0 %v1206_v3  ;;  %906 = vmatprep.mubr.msk.f32.mxu1 %vm1207_vm1, %v1206_v3  ;;  %s1113_s18 = scalar_lea.vmem %s1432_s13, 64  ;;  %s1210_s19 = smov [#allocation10]  }
  0x5d   : > { %896 = vmatpush3.msra.mxu0 %v346_v7  ;;  %v352_v9 = vld [vmem:[#allocation2] sm:$0x3]  ;;  %903 = vmatpush3.msra.mxu1 %v350_v20  ;;  %p1114_p9 = scmp.ne.s32.totalorder %s1432_s13, %s1113_s18  ;;  %s1117_s2 = sshll.u32 %s1210_s19, 4  ;;  %s1118_s2 = int_to_ptr.vmem [resolvable:$false] %s1117_s2 }
  0x5e   : > { %897 = vmatprep.subr.mxu0 %v1206_v3  ;;  %904 = vmatprep.subr.mxu1 %v1206_v3  ;;  %s1119_s21 = scalar_lea.vmem %s1118_s2, 128  ;;  %p1120_p12 = scmp.lt.s32.totalorder %s1432_s13, %s1118_s2 }
  0x5f   : > { %898 = vmatpush3.msra.mxu0 %v345_v8  ;;  %905 = vmatpush3.msra.mxu1 %v349_v21  ;;  %p1115_p10 = pnand %p1114_p9, %p1345_p7  ;;  %p1121_p13 = scmp.lt.s32.totalorder %s1119_s21, %s1113_s18 }
  0x60   : > { %900 = vmatmul.mubr.msk.f32.vlgmr.msra.gmra.mxu0 %vm354_vm2, %v352_v9  ;;  %920 = vmatprep.subr.mxu0 %v1206_v3 }
  0x61   : > { %924 = vmatprep.mubr.msk.f32.mxu0 %vm1207_vm1, %v1206_v3  ;;  %921 = vmatpush3.msra.mxu0 %v350_v20  ;;  %p1116_p2 = pneg %p1115_p10  ;;  %p1122_p3 = por %p1121_p13, %p1120_p12 }
  0x62   : > { %922 = vmatprep.subr.mxu0 %v1206_v3  ;;  %909 = vmatprep.subr.mxu1 %v1206_v3 }
  0x63   : > { %923 = vmatpush3.msra.mxu0 %v349_v21  ;;  %p1123_p0 = pnand %p1122_p3, %p1116_p2 }
  0xd5   : > { %v437_v14 = vpop.permute.xlu0 %436 }
 0x120   : > { %v424_v11 = vpop.f32.mrf.mxu0 }
 0x121   : > { %v428_v12 = vadd.f32 %v424_v11, %v353_v10 }
 0x122   : > { %v901_v13 = vpop.f32.mrf.mxu0 }
 0x123   : > { %1021 = vtanh.f32 %v428_v12 }
 0x130   : > { %v1022_v15 = vpop.eup %1021 }
 0x131   : > { %v439_v16 = vmul.f32 %v1022_v15, %v437_v14 }
 0x133   : > { %v860_v17 = vmul.f32 -1.442695, %v439_v16 }
 0x135   : > { %1023 = vpow2.f32 %v860_v17 }
 0x142   : > { %v1024_v18 = vpop.eup %1023 }
 0x143   : > { %v443_v19 = vadd.f32 1.0, %v1024_v18 }
 0x145   : > { %1025 = vrcp.f32 %v443_v19 }
 0x152   : > { %v1026_v22 = vpop.eup %1025 }
 0x153   : > { %447 = vrot.lane.b32.xlu0 %v1026_v22, %s1209_s30  ;;  %v451_v23 = vmul.f32 2.0, %v1026_v22 }
 0x1c5   : > { %v448_v24 = vpop.permute.xlu0 %447 }
 0x1c6   : > { %v450_v25 = vadd.f32 %v1026_v22, %v448_v24  ;;  %v452_v26 = vmul.f32 %v451_v23, %v448_v24 }
 0x1c8   : > { %v453_v27 = vsub.f32 %v450_v25, %v452_v26 }
 0x1ca   : > { %v454_v28 = vmul.f32 0.5, %v453_v27 }
 0x1cc   : > { %907 = vmatmul.mubr.msk.f32.vlgmr.msra.gmra.mxu1 %vm461_vm3, %v454_v28 }
 0x1cd   : > { %910 = vmatpush3.msra.mxu1 %v348_v2  ;;  %917 = vmatprep.mubr.msk.f32.mxu1 %vm1207_vm1, %v1206_v3 }
 0x1ce   : > { %911 = vmatprep.subr.mxu1 %v1206_v3 }
 0x1cf   : > { %912 = vmatpush3.msra.mxu1 %v347_v4 }
 0x1d0   : > { %913 = vmatprep.subr.mxu1 %v1206_v3 }
 0x1d1   : > { %914 = vmatpush3.msra.mxu1 %v346_v7 }
 0x1d2   : > { %915 = vmatprep.subr.mxu1 %v1206_v3 }
 0x1d3   : > { %916 = vmatpush3.msra.mxu1 %v345_v8 }
 0x28c   : > { %v531_v30 = vpop.f32.mrf.mxu1 }
 0x28d   : > { %v532_v31 = vadd.f32 %v861_v29, %v531_v30 }
 0x28e   : > { %v908_v32 = vpop.f32.mrf.mxu1 }
 0x28f   : > { %v535_v33 = vadd.f32 %v532_v31, %v439_v16 }
 0x291   : > { %537 = vst.msk [vmem:[%s1386_s10] sm:$0x3] %vm536_vm4, %v535_v33  ;;  %918 = vmatmul.mubr.msk.f32.vlgmr.msra.gmra.mxu1 %vm354_vm2, %v535_v33 }
 0x351   : > { %v609_v35 = vpop.f32.mrf.mxu1 }
 0x352   : > { %v613_v36 = vadd.f32 %v863_v34, %v609_v35 }
 0x353   : > { %v919_v37 = vpop.f32.mrf.mxu1 }
 0x354   : > { %1027 = vtanh.f32 %v613_v36 }
 0x361   : > { %v1028_v38 = vpop.eup %1027 }
 0x362   : > { %v615_v39 = vmul.f32 %v1028_v38, %v437_v14 }
 0x364   : > { %v865_v40 = vmul.f32 -1.442695, %v615_v39 }
 0x366   : > { %1029 = vpow2.f32 %v865_v40 }
 0x373   : > { %v1030_v41 = vpop.eup %1029 }
 0x374   : > { %v619_v42 = vadd.f32 1.0, %v1030_v41 }
 0x376   : > { %1031 = vrcp.f32 %v619_v42 }
 0x383   : > { %v1032_v43 = vpop.eup %1031 }
 0x384   : > { %623 = vrot.lane.b32.xlu1 %v1032_v43, %s1209_s30  ;;  %v627_v44 = vmul.f32 2.0, %v1032_v43 }
 0x3f6   : > { %v624_v45 = vpop.permute.xlu1 %623 }
 0x3f7   : > { %v626_v46 = vadd.f32 %v1032_v43, %v624_v45  ;;  %v628_v47 = vmul.f32 %v627_v44, %v624_v45 }
 0x3f9   : > { %v629_v48 = vsub.f32 %v626_v46, %v628_v47 }
 0x3fb   : > { %v630_v49 = vmul.f32 0.5, %v629_v48 }
 0x3fd   : > { %925 = vmatmul.mubr.msk.f32.vlgmr.msra.gmra.mxu0 %vm461_vm3, %v630_v49 }
 0x4bd   : > { %v700_v50 = vpop.f32.mrf.mxu0 }
 0x4be   : > { %v701_v51 = vadd.f32 %v861_v29, %v700_v50 }
 0x4bf   : > { %v926_v52 = vpop.f32.mrf.mxu0 }
 0x4c0   : > { %v704_v53 = vadd.f32 %v701_v51, %v615_v39 }
 0x4c2   : > { %867 = vst.msk [vmem:[%s1386_s10 + $0x2] sm:$0x3] %vm536_vm4, %v704_v53  ;;  %707 = vst.msk [vmem:[#allocation2] sm:$0x3] %vm536_vm4, %v704_v53 }
 0x4c3   : > { %1126 = shalt.err (!%p1123_p0)
}
 0x4c4   : > { %s1127_s10 = scalar_lea.hbm %s1430_s15, 64  ;;  %s1131_s30 = scalar_lea.hbm %s1488_s6, 256 }
 0x4c5   : > { %p1128_p1 = scmp.ne.s32.totalorder %s1430_s15, %s1127_s10  ;;  %p1132_p11 = scmp.lt.s32.totalorder %s1430_s15, %s1488_s6 }
 0x4c6   : > { %p1133_p5 = scmp.lt.s32.totalorder %s1131_s30, %s1127_s10 }
 0x4c7   : > { %p1129_p4 = pnand %p1128_p1, %p1345_p7 }
 0x4c8   : > { %p1134_p8 = por %p1133_p5, %p1132_p11 }
 0x4c9   : > { %p1130_p6 = pneg %p1129_p4 }
 0x4cb   : > { %p1135_p9 = pnand %p1134_p8, %p1130_p6 }
 0x4cd   : > { %1138 = shalt.err (!%p1135_p9)
}
 0x4ce   : > { %s1211_s5 = smov 32   ;;  %s1212_s11 = smov 2  }
 0x4cf   : > { %937 = dma.vmem_to_hbm [thread:$0]  (%p1345_p7), %s1432_s13, 64, %s1430_s15, %s709_s26, %s1211_s5, %s1211_s5, %s1212_s11  }
 0x4d0 PF: > { %p959_p10 = scmp.ge.s32.totalorder %s1197_s28, 2  ;;  %s738_s16 = sand.u32 1, %s1177_s23  }
 0x4d1   : > { %p1504_p2 = scmp.ne.s32.totalorder %s1496_s9, 0  ;;  %s739_s18 = scalar_lea.sflag [#allocation6], %s738_s16 }
 0x4d3   : > { %p951_p12 = pnand %p959_p10, %p1504_p2 }
 0x4d5   : > { %p952_p13 = pneg %p951_p12 }
 0x4d7   : > { %1172 = dma.done.wait (%p952_p13), %s739_s18, 64  }
 0x4d8   : > { %1174 = vsyncadd (%p952_p13), %s739_s18, 4294967232  ;;  %s25_s28 = sadd.s32 1, %s1197_s28   ;;  %s1505_s23 = smov %s1181_s24 }
 0x4d9   : > { %p22_p3 = scmp.ge.s32.totalorder %s25_s28, 6   ;;  %s1506_s24 = smov %s1185_s25 }
 0x4da   : > { %s1507_s25 = smov %s1354_s17  ;;  %s1508_s26 = smov %s1193_s27 }
 0x4db   : > { %s1509_s27 = smov %s1511_s29  ;;  %24 = sbr.rel (!%p22_p3) target bundleno = 10 (0xa), region = 106 }
 0x4e0   :  { %744 = vsyncpa [#allocation5], 1 }
 0x4e1   :  { %746 = vsyncpa [#allocation5 + $0x1], 1 }
 0x4e2   :  { %747 = vsyncpa [#allocation8], 1 }
 0x4e3   :  { %748 = vsyncpa [#allocation6], 1 }
 0x4e4   :  { %750 = vsyncpa [#allocation6 + $0x1], 1 }

</bundles_post_ra>
